<compile_context>
chip_gen: v5e
topology: v5e:2x2
jax: 0.10.0
libtpu: 0.0.40
codegen_flags: <defaults>
</compile_context>

<pallas_src>
import functools

import jax
import jax.numpy as jnp
from jax.experimental import pallas as pl
from jax.experimental.pallas import tpu as pltpu


# ----------------------------- roll-direction probe ---------------------------

def _probe_roll_sign():
    """Returns +1 if pltpu.roll follows np.roll semantics (y[i] = x[i - shift]),
    -1 if it is the opposite convention."""
    def k(x_ref, o_ref):
        o_ref[...] = pltpu.roll(x_ref[...], 1, 1)

    x = jnp.broadcast_to(jnp.arange(128, dtype=jnp.float32), (8, 128))
    y = pl.pallas_call(k, out_shape=jax.ShapeDtypeStruct((8, 128), jnp.float32))(x)
    return 1 if int(y[0, 0]) == 127 else -1


# --------------------------------- kernel -------------------------------------

def _make_kernel(H, W, roll_sign):
    HW = H * W

    def kernel(cost_ref,
               wx1_ref, whg1_ref, whc1_ref, bx1_ref,
               wx2_ref, whg2_ref, whc2_ref, bx2_ref,
               wx3_ref, whg3_ref, whc3_ref, bx3_ref,
               wf_ref, bf_ref,
               out_ref,
               s1_ref, s2_ref, s3_ref):
        d = pl.program_id(1)

        # torch.zeros(...) hidden states at the start of each batch's depth sweep.
        @pl.when(d == 0)
        def _():
            s1_ref[...] = jnp.zeros_like(s1_ref)
            s2_ref[...] = jnp.zeros_like(s2_ref)
            s3_ref[...] = jnp.zeros_like(s3_ref)

        # Per-pixel (h, w) index maps for the 3x3 boundary masks (pixels on lanes).
        p = jax.lax.broadcasted_iota(jnp.int32, (1, HW), 1)
        h_idx = p // W
        w_idx = p - h_idx * W
        ok_top = (h_idx >= 1).astype(jnp.float32)        # tap dy = -1 valid
        ok_bot = (h_idx <= H - 2).astype(jnp.float32)    # tap dy = +1 valid
        ok_lft = (w_idx >= 1).astype(jnp.float32)        # tap dx = -1 valid
        ok_rgt = (w_idx <= W - 2).astype(jnp.float32)    # tap dx = +1 valid

        def edge_mask(dy, dx):
            m = None
            if dy == -1:
                m = ok_top
            elif dy == 1:
                m = ok_bot
            if dx == -1:
                m = ok_lft if m is None else m * ok_lft
            elif dx == 1:
                m = ok_rgt if m is None else m * ok_rgt
            return m

        taps = [(dy * W + dx, edge_mask(dy, dx))
                for dy in (-1, 0, 1) for dx in (-1, 0, 1)]

        def im2col(x):
            # x: (C, HW) -> (9*C, HW); row order = tap-major, channel-minor,
            # matching the (Cout, 9*Cin) packed weights.
            parts = []
            for delta, m in taps:
                if delta == 0:
                    s = x
                else:
                    s = pltpu.roll(x, (-roll_sign * delta) % HW, 1)
                if m is not None:
                    s = s * m                     # zero out-of-image neighbours
                parts.append(s)
            return jnp.concatenate(parts, axis=0)

        def gru(x_cols, h, wx, whg, whc, bx, cout):
            # Fused x-side conv: rows [0, 2*cout) = gates, [2*cout, 3*cout) = candidate,
            # with the gate/candidate biases already folded in.
            xall = jnp.dot(wx, x_cols, preferred_element_type=jnp.float32) + bx
            hg = jnp.dot(whg, im2col(h), preferred_element_type=jnp.float32)
            g = jax.nn.sigmoid(xall[:2 * cout] + hg)
            r = g[:cout]
            z = g[cout:]
            hc = jnp.dot(whc, im2col(r * h), preferred_element_type=jnp.float32)
            n = jnp.tanh(xall[2 * cout:] + hc)
            return (1.0 - z) * h + z * n

        x_cols = im2col(-cost_ref[0, 0])                  # (9*32, HW); "-cost" as in torch
        h1 = gru(x_cols, s1_ref[...], wx1_ref[...], whg1_ref[...],
                 whc1_ref[...], bx1_ref[...], 16)
        s1_ref[...] = h1
        h2 = gru(im2col(h1), s2_ref[...], wx2_ref[...], whg2_ref[...],
                 whc2_ref[...], bx2_ref[...], 4)
        s2_ref[...] = h2
        h3 = gru(im2col(h2), s3_ref[...], wx3_ref[...], whg3_ref[...],
                 whc3_ref[...], bx3_ref[...], 2)
        s3_ref[...] = h3
        out_ref[0, 0] = (jnp.dot(wf_ref[...], im2col(h3),
                                 preferred_element_type=jnp.float32) + bf_ref[...])

    return kernel


# ------------------------------ weight packing ---------------------------------

def _pack_w(w):
    """(3,3,Cin,Cout) HWIO -> (Cout, 9*Cin), column index = (ky*3+kx)*Cin + ci."""
    return jnp.transpose(w, (3, 0, 1, 2)).reshape(w.shape[3], -1)


def _pack_params(params):
    (wg1x, wg1h, bg1, wc1x, wc1h, bc1,
     wg2x, wg2h, bg2, wc2x, wc2h, bc2,
     wg3x, wg3h, bg3, wc3x, wc3h, bc3, wf, bf) = params

    def cell(wgx, wgh, bg, wcx, wch, bc):
        wx = jnp.concatenate([_pack_w(wgx), _pack_w(wcx)], axis=0)      # (3*Cout, 9*Cin)
        bx = jnp.concatenate([bg.reshape(-1, 1), bc.reshape(-1, 1)], 0)  # (3*Cout, 1)
        return [wx, _pack_w(wgh), _pack_w(wch), bx]

    packed = []
    packed += cell(wg1x, wg1h, bg1, wc1x, wc1h, bc1)
    packed += cell(wg2x, wg2h, bg2, wc2x, wc2h, bc2)
    packed += cell(wg3x, wg3h, bg3, wc3x, wc3h, bc3)
    packed += [_pack_w(wf), bf.reshape(1, 1)]
    return packed


# --------------------------------- wrapper -------------------------------------

def rmvs_regularization_pallas(volume, params, *, roll_sign=1):
    """volume: (B, 32, D, H, W) float32 -> (B, D, H, W) float32."""
    B, C, D, H, W = volume.shape
    HW = H * W
    vol = jnp.transpose(volume, (2, 0, 1, 3, 4)).reshape(D, B, C, HW).astype(jnp.float32)
    packed = _pack_params(params)
    kernel = _make_kernel(H, W, roll_sign)

    def wspec(a):
        return pl.BlockSpec(a.shape, lambda b, d: (0, 0))   # resident weights

    out = pl.pallas_call(
        kernel,
        out_shape=jax.ShapeDtypeStruct((D, B, 1, HW), jnp.float32),
        grid_spec=pltpu.PrefetchScalarGridSpec(
            num_scalar_prefetch=0,
            grid=(B, D),                                     # D inner = GRU recurrence
            in_specs=[pl.BlockSpec((1, 1, C, HW), lambda b, d: (d, b, 0, 0))]
                     + [wspec(a) for a in packed],
            out_specs=pl.BlockSpec((1, 1, 1, HW), lambda b, d: (d, b, 0, 0)),
            scratch_shapes=[pltpu.VMEM((16, HW), jnp.float32),
                            pltpu.VMEM((4, HW), jnp.float32),
                            pltpu.VMEM((2, HW), jnp.float32)]),
        compiler_params=pltpu.CompilerParams(
            dimension_semantics=("parallel", "arbitrary"),   # batch across TCs, depth serial
            vmem_limit_bytes=48 * 1024 * 1024),
    )(vol, *packed)
    # (D, B, 1, HW) -> (B, D, H, W)
    return jnp.transpose(out[:, :, 0, :], (1, 0, 2)).reshape(B, D, H, W)


# ------------------------- deterministic parameters ----------------------------

def init_params(key):
    """Weights in reference order; conv weights HWIO, biases (1, Cout).
    Gate/candidate weights are pre-split into x-part and h-part along Cin."""
    def gru_shapes(cin, cout):
        return [(3, 3, cin, 2 * cout), (3, 3, cout, 2 * cout), (1, 2 * cout),
                (3, 3, cin, cout), (3, 3, cout, cout), (1, cout)]
    shapes = (gru_shapes(32, 16) + gru_shapes(16, 4) + gru_shapes(4, 2)
              + [(3, 3, 2, 1), (1, 1)])
    keys = jax.random.split(key, len(shapes))
    return [0.1 * jax.random.normal(k, s, jnp.float32) for k, s in zip(keys, shapes)]


# ------------------------------ pure-JAX reference -----------------------------

def _conv3x3_ref(x, w, bias=None):
    y = jax.lax.conv_general_dilated(
        x, w, window_strides=(1, 1), padding="SAME",
        dimension_numbers=("NHWC", "HWIO", "NHWC"),
        precision=jax.lax.Precision.HIGHEST)
    if bias is not None:
        y = y + bias.reshape(1, 1, 1, -1)
    return y


def _gru_ref(x, h, wgx, wgh, bg, wcx, wch, bc):
    cout = h.shape[-1]
    g = jax.nn.sigmoid(_conv3x3_ref(x, wgx, bg) + _conv3x3_ref(h, wgh))
    r, z = g[..., :cout], g[..., cout:]
    n = jnp.tanh(_conv3x3_ref(x, wcx, bc) + _conv3x3_ref(r * h, wch))
    return (1.0 - z) * h + z * n


def rmvs_regularization_ref(volume, params):
    (wg1x, wg1h, bg1, wc1x, wc1h, bc1,
     wg2x, wg2h, bg2, wc2x, wc2h, bc2,
     wg3x, wg3h, bg3, wc3x, wc3h, bc3, wf, bf) = params
    B, F, D, H, W = volume.shape
    h1 = jnp.zeros((B, H, W, 16), jnp.float32)
    h2 = jnp.zeros((B, H, W, 4), jnp.float32)
    h3 = jnp.zeros((B, H, W, 2), jnp.float32)
    outs = []
    for d in range(D):
        x = -jnp.transpose(volume[:, :, d], (0, 2, 3, 1))
        h1 = _gru_ref(x, h1, wg1x, wg1h, bg1, wc1x, wc1h, bc1)
        h2 = _gru_ref(h1, h2, wg2x, wg2h, bg2, wc2x, wc2h, bc2)
        h3 = _gru_ref(h2, h3, wg3x, wg3h, bg3, wc3x, wc3h, bc3)
        outs.append(_conv3x3_ref(h3, wf, bf)[..., 0])
    return jnp.stack(outs, axis=1)  # (B, D, H, W)


# ----------------------------------- main ---------------------------------------

if __name__ == "__main__":
    key = jax.random.PRNGKey(0)
    k_vol, k_par = jax.random.split(key)

    B, C, D, H, W = 2, 32, 4, 16, 16   # small shapes consistent with the module
    volume = jax.random.normal(k_vol, (B, C, D, H, W), jnp.float32)
    params = init_params(k_par)

    roll_sign = _probe_roll_sign()

    fn = jax.jit(functools.partial(rmvs_regularization_pallas, roll_sign=roll_sign))
    out = jax.block_until_ready(fn(volume, params))

    ref = rmvs_regularization_ref(volume, params)
    assert out.shape == (B, D, H, W), out.shape
    max_err = float(jnp.max(jnp.abs(out - ref)))
    assert max_err < 5e-3, f"max abs err {max_err}"

    print("KERNEL_OK")
</pallas_src>

<mosaic_0001>
module attributes {stable_mosaic.version = 11 : i64} {
  func.func @k(%arg0: memref<8x128xf32, #tpu.memory_space<vmem>>, %arg1: memref<8x128xf32, #tpu.memory_space<vmem>>) attributes {dimension_semantics = [], scalar_prefetch = 0 : i64, scratch_operands = 0 : i64, tpu.core_type = #tpu.core_type<tc>} {
    %c0 = arith.constant 0 : index
    %c0_0 = arith.constant 0 : index
    %0 = vector.load %arg0[%c0, %c0_0] : memref<8x128xf32, #tpu.memory_space<vmem>>, vector<8x128xf32>
    %c1_i32 = arith.constant 1 : i32
    %1 = tpu.dynamic_rotate %0 by %c1_i32 dim 1 : vector<8x128xf32>, i32 -> vector<8x128xf32>
    %c0_1 = arith.constant 0 : index
    %c0_2 = arith.constant 0 : index
    %2 = vector.load %arg1[%c0_1, %c0_2] : memref<8x128xf32, #tpu.memory_space<vmem>>, vector<8x128xf32>
    tpu.vector_store %arg1[%c0_1, %c0_2], %1 {strides = array<i32>} : memref<8x128xf32, #tpu.memory_space<vmem>>, vector<8x128xf32>,
    return
  }
}

</mosaic_0001>

<bundles_post_ra>
// kernel: tpu_custom_call.1
= control target key start
LH: loop header
LB: loop body
LE: loop exit
PB: predicated region body
PF: predicated region fallthrough
CT: control target
= control target key end

     0   :  { %6 = vsyncpa [#allocation3], 0  ;;  %s118_s0 = inlined_call_operand.hbm [shape: f32[8,128], index: 0, kind: input, shape index: {}]   ;;  %s119_s1 = inlined_call_operand.hbm [shape: f32[8,128], index: 1, kind: output, shape index: {}]  }
   0x1   :  { %7 = vsyncpa [#allocation4], 0  ;;  %s13_s8 = sshll.u32 %s118_s0, 4  ;;  %s99_s9 = smov [#allocation2]   ;;  %s14_s8 = int_to_ptr.hbm [resolvable:$true] %s13_s8 }
   0x2   :  { %s15_s10 = sshll.u32 %s99_s9, 4  ;;  %s16_s10 = int_to_ptr.vmem [resolvable:$true] %s15_s10 }
   0x3   :  { %18 = dma.hbm_to_vmem [thread:$0]  %s14_s8, 128, %s16_s10, [#allocation3]  }
   0x4   :  { %95 = dma.done.wait [#allocation3], 128  }
   0x5   :  { %96 = vsyncadd [#allocation3], 4294967168  ;;  %v23_v0 = vld [vmem:[#allocation2] sm:$0xff]  ;;  %s100_s11 = smov 1   ;;  %s101_s12 = smov [#allocation5]  }
   0x6   :  { %24 = vrot.lane.b32.xlu0 %v23_v0, %s100_s11  ;;  %s32_s13 = sshll.u32 %s101_s12, 4  ;;  %s34_s16 = sshll.u32 %s119_s1, 4  ;;  %s33_s13 = int_to_ptr.vmem [resolvable:$true] %s32_s13  ;;  %s35_s16 = int_to_ptr.hbm [resolvable:$true] %s34_s16 }
  0x78   :  { %v25_v1 = vpop.permute.xlu0 %24 }
  0x79   :  { %26 = vst [vmem:[#allocation5] sm:$0xff] %v25_v1 }
  0x7a   :  { %37 = dma.vmem_to_hbm [thread:$0]  %s33_s13, 128, %s35_s16, [#allocation4]  }
  0x7b   :  { %97 = dma.done.wait [#allocation4], 128  }
  0x7c   :  { %98 = vsyncadd [#allocation4], 4294967168 }
  0x7d   :  { %42 = vsyncpa [#allocation3], 1 }
  0x7e   :  { %43 = vsyncpa [#allocation4], 1 }

</bundles_post_ra>
